<compile_context>
chip_gen: v6e
topology: v6e:2x2x1
jax: 0.10.0
libtpu: 0.0.40
codegen_flags: <defaults>
</compile_context>

<pallas_src>
import numpy as np
import jax
import jax.numpy as jnp
from jax.experimental import pallas as pl
from jax.experimental.pallas import tpu as pltpu


def _mixup_kernel(lamb_ref, x_fa_ref, x_icg_ref, x_out_ref):
    """mixed = x_ICG + lamb * (x_FA - x_ICG), lamb broadcast per row (= sample)."""
    lamb = lamb_ref[...]                                   # (TB, 1) float32
    x_fa = x_fa_ref[...].astype(jnp.float32)
    x_icg = x_icg_ref[...].astype(jnp.float32)
    mixed = x_icg + lamb * (x_fa - x_icg)
    x_out_ref[...] = mixed.astype(x_out_ref.dtype)


def _pick_lane_tile(chw_p, max_lane=64 * 1024):
    """Largest multiple of 128 dividing chw_p and <= max_lane (chw_p is 128-aligned)."""
    if chw_p <= max_lane:
        return chw_p
    tl = (max_lane // 128) * 128
    while tl >= 128:
        if chw_p % tl == 0:
            return tl
        tl -= 128
    return chw_p


def _pick_batch_tile(B, tl, elem_bytes, budget_bytes=12 << 20):
    """Largest batch tile (full B, or a multiple of 8 dividing B) keeping the three
    double-buffered streams (x_FA, x_ICG, out) under `budget_bytes` of VMEM."""
    per_row = tl * elem_bytes * 3 * 2
    max_tb = max(1, budget_bytes // per_row)
    if B <= max_tb:
        return B
    tb = (min(max_tb, B) // 8) * 8
    while tb >= 8:
        if B % tb == 0:
            return tb
        tb -= 8
    return B  # fallback: whole batch (still correct)


def teacher_net_forward(x_FA, x_ICG, target_l, *, rng_key, alpha=1.0,
                        mix_up=True, warm_up=False):
    """Functional equivalent of Teacher_Net.forward (mix_up path).

    PyTorch mutates x_FA / target_l in place and returns None when warm_up=False;
    being functional, we return the mixed (x_FA, target_l) instead.
    """
    if not mix_up:
        mixed_x, mixed_t = x_FA, target_l
    else:
        B = x_FA.shape[0]
        chw = int(np.prod(x_FA.shape[1:]))

        # lambda_i ~ Beta(alpha, alpha) per batch element (deterministic via PRNGKey).
        lamb = jax.random.beta(rng_key, alpha, alpha, shape=(B,)).astype(jnp.float32)
        lamb2d = lamb.reshape(B, 1)

        # Lane-dense 2D layout: (B, C*H*W), padded up to a multiple of 128 lanes
        # only if the flattened feature size is not already 128-aligned.
        x_fa_2d = x_FA.reshape(B, chw)
        x_icg_2d = x_ICG.reshape(B, chw)
        pad = (-chw) % 128
        chw_p = chw + pad
        if pad:
            x_fa_2d = jnp.pad(x_fa_2d, ((0, 0), (0, pad)))
            x_icg_2d = jnp.pad(x_icg_2d, ((0, 0), (0, pad)))

        tl = _pick_lane_tile(chw_p)
        tb = _pick_batch_tile(B, tl, jnp.dtype(x_FA.dtype).itemsize)
        grid = (B // tb, chw_p // tl)

        mixed_2d = pl.pallas_call(
            _mixup_kernel,
            out_shape=jax.ShapeDtypeStruct((B, chw_p), x_FA.dtype),
            grid_spec=pltpu.PrefetchScalarGridSpec(
                num_scalar_prefetch=0,
                grid=grid,
                in_specs=[
                    pl.BlockSpec((tb, 1), lambda i, j: (i, 0)),    # per-sample lamb
                    pl.BlockSpec((tb, tl), lambda i, j: (i, j)),   # x_FA tile
                    pl.BlockSpec((tb, tl), lambda i, j: (i, j)),   # x_ICG tile
                ],
                out_specs=pl.BlockSpec((tb, tl), lambda i, j: (i, j)),
            ),
            compiler_params=pltpu.CompilerParams(
                dimension_semantics=("parallel", "parallel"),
            ),
        )(lamb2d, x_fa_2d, x_icg_2d)

        if pad:
            mixed_2d = mixed_2d[:, :chw]
        mixed_x = mixed_2d.reshape(x_FA.shape)
        # lamb*t + (1-lamb)*t == t: the reference target "mixup" is an identity,
        # so pass target_l through without an HBM round-trip.
        mixed_t = target_l

    if warm_up:
        # TODO(synk): warm_up_forward requires EncoderNetwork / DecoderNetwork /
        # DiceLoss definitions, which were not provided in the reference source.
        raise NotImplementedError("warm_up path not available (sub-modules not provided)")

    return mixed_x, mixed_t


if __name__ == "__main__":
    key = jax.random.PRNGKey(0)
    k_fa, k_icg, k_tgt, k_lamb = jax.random.split(key, 4)

    B, C, H, W = 2, 4, 16, 16
    x_FA = jax.random.normal(k_fa, (B, C, H, W), dtype=jnp.float32)
    x_ICG = jax.random.normal(k_icg, (B, C, H, W), dtype=jnp.float32)
    target_l = jax.random.normal(k_tgt, (B, 1, H, W), dtype=jnp.float32)

    mixed_x, mixed_t = teacher_net_forward(
        x_FA, x_ICG, target_l, rng_key=k_lamb, mix_up=True, warm_up=False
    )
    jax.block_until_ready((mixed_x, mixed_t))

    # Pure-JAX reference check (same lambdas).
    lamb_ref = jax.random.beta(k_lamb, 1.0, 1.0, shape=(B,)).astype(jnp.float32)
    l = lamb_ref[:, None, None, None]
    ref_x = l * x_FA + (1.0 - l) * x_ICG
    ref_t = target_l  # lamb*t + (1-lamb)*t == t
    assert jnp.allclose(mixed_x, ref_x, atol=1e-5), "x mismatch"
    assert jnp.allclose(mixed_t, ref_t, atol=1e-6), "target mismatch"

    print("KERNEL_OK")
</pallas_src>

<mosaic_0001>
module attributes {stable_mosaic.version = 11 : i64} {
  func.func @_mixup_kernel(%arg0: i32, %arg1: i32, %arg2: memref<2x1xf32, #tpu.memory_space<vmem>>, %arg3: memref<2x1024xf32, #tpu.memory_space<vmem>>, %arg4: memref<2x1024xf32, #tpu.memory_space<vmem>>, %arg5: memref<2x1024xf32, #tpu.memory_space<vmem>>) attributes {dimension_semantics = [#tpu.dimension_semantics<parallel>, #tpu.dimension_semantics<parallel>], iteration_bounds = array<i64: 1, 1>, scalar_prefetch = 0 : i64, scratch_operands = 0 : i64, tpu.core_type = #tpu.core_type<tc>, window_params = [{transform_indices = @transform_0, window_bounds = array<i64: 2, 1>}, {transform_indices = @transform_1, window_bounds = array<i64: 2, 1024>}, {transform_indices = @transform_2, window_bounds = array<i64: 2, 1024>}, {transform_indices = @transform_3, window_bounds = array<i64: 2, 1024>}]} {
    %c0 = arith.constant 0 : index
    %c0_0 = arith.constant 0 : index
    %0 = vector.load %arg2[%c0, %c0_0] : memref<2x1xf32, #tpu.memory_space<vmem>>, vector<2x1xf32>
    %c0_1 = arith.constant 0 : index
    %c0_2 = arith.constant 0 : index
    %1 = vector.load %arg3[%c0_1, %c0_2] : memref<2x1024xf32, #tpu.memory_space<vmem>>, vector<2x1024xf32>
    %c0_3 = arith.constant 0 : index
    %c0_4 = arith.constant 0 : index
    %2 = vector.load %arg4[%c0_3, %c0_4] : memref<2x1024xf32, #tpu.memory_space<vmem>>, vector<2x1024xf32>
    %3 = arith.subf %1, %2 : vector<2x1024xf32>
    %4 = vector.broadcast %0 : vector<2x1xf32> to vector<2x1024xf32>
    %5 = arith.mulf %4, %3 : vector<2x1024xf32>
    %6 = arith.addf %2, %5 : vector<2x1024xf32>
    %c0_5 = arith.constant 0 : index
    %c0_6 = arith.constant 0 : index
    %7 = vector.load %arg5[%c0_5, %c0_6] : memref<2x1024xf32, #tpu.memory_space<vmem>>, vector<2x1024xf32>
    tpu.vector_store %arg5[%c0_5, %c0_6], %6 {strides = array<i32>} : memref<2x1024xf32, #tpu.memory_space<vmem>>, vector<2x1024xf32>,
    return
  }
  func.func @transform_0(%arg0: i32, %arg1: i32) -> (i32, i32) {
    %c0_i32 = arith.constant 0 : i32
    %c0_i32_0 = arith.constant 0 : i32
    return %arg0, %c0_i32 : i32, i32
  }
  func.func @transform_1(%arg0: i32, %arg1: i32) -> (i32, i32) {
    %c0_i32 = arith.constant 0 : i32
    return %arg0, %arg1 : i32, i32
  }
  func.func @transform_2(%arg0: i32, %arg1: i32) -> (i32, i32) {
    %c0_i32 = arith.constant 0 : i32
    return %arg0, %arg1 : i32, i32
  }
  func.func @transform_3(%arg0: i32, %arg1: i32) -> (i32, i32) {
    %c0_i32 = arith.constant 0 : i32
    return %arg0, %arg1 : i32, i32
  }
}

</mosaic_0001>

<bundles_post_ra>
// kernel: tpu_custom_call.1
= control target key start
LH: loop header
LB: loop body
LE: loop exit
PB: predicated region body
PF: predicated region fallthrough
CT: control target
= control target key end

     0   :  { %8 = vsyncpa [#allocation3], 0  ;;  %s276_s0 = inlined_call_operand.vmem [shape: f32[2,1], index: 0, kind: input, shape index: {}]   ;;  %s277_s1 = inlined_call_operand.hbm [shape: f32[2,1024], index: 1, kind: input, shape index: {}]   ;;  %s278_s2 = inlined_call_operand.hbm [shape: f32[2,1024], index: 2, kind: input, shape index: {}]   ;;  %s279_s3 = inlined_call_operand.hbm [shape: f32[2,1024], index: 3, kind: output, shape index: {}]  }
   0x1   :  { %9 = vsyncpa [#allocation6], 0 }
   0x2   :  { %10 = vsyncpa [#allocation4], 0  ;;  %s239_s12 = smov [#allocation2]   ;;  %s240_s14 = smov [#allocation5]  }
   0x3   :  { %s19_s13 = sshll.u32 %s239_s12, 4  ;;  %s29_s15 = sshll.u32 %s240_s14, 4  ;;  %s20_s13 = int_to_ptr.vmem [resolvable:$true] %s19_s13  ;;  %s30_s15 = int_to_ptr.vmem [resolvable:$true] %s29_s15 }
   0x4   :  { %s181_s16 = scalar_lea.vmem %s20_s13, 256  ;;  %p186_p1 = scmp.lt.s32.totalorder %s20_s13, %s20_s13 }
   0x5   :  { %p182_p0 = scmp.ne.s32.totalorder %s20_s13, %s181_s16  ;;  %p187_p2 = scmp.lt.s32.totalorder %s181_s16, %s181_s16 }
   0x7   :  { %p188_p3 = por %p187_p2, %p186_p1 }
   0x9   :  { %p189_p4 = pnand %p188_p3, %p182_p0 }
   0xb   :  { %192 = shalt.err (!%p189_p4)
}
   0xc   :  { %22 = dma.hbm_to_vmem [thread:$0]  %s277_s1, 256, %s20_s13, [#allocation3]  }
   0xd   :  { %s201_s19 = scalar_lea.vmem %s30_s15, 256  ;;  %p206_p6 = scmp.lt.s32.totalorder %s30_s15, %s30_s15 }
   0xe   :  { %p202_p5 = scmp.ne.s32.totalorder %s30_s15, %s201_s19  ;;  %p207_p7 = scmp.lt.s32.totalorder %s201_s19, %s201_s19 }
  0x10   :  { %p208_p8 = por %p207_p7, %p206_p6 }
  0x12   :  { %p209_p9 = pnand %p208_p8, %p202_p5 }
  0x14   :  { %212 = shalt.err (!%p209_p9)
}
  0x15   :  { %32 = dma.hbm_to_vmem [thread:$0]  %s278_s2, 256, %s30_s15, [#allocation6]  }
  0x16   :  { %233 = dma.done.wait [#allocation3], 256  }
  0x17   :  { %234 = vsyncadd [#allocation3], 4294967040 }
  0x18   :  { %235 = dma.done.wait [#allocation6], 256  }
  0x19   :  { %236 = vsyncadd [#allocation6], 4294967040  ;;  %v241_v0 = vmov 0   ;;  %v39_v1 = vld [vmem:[%s276_s0] sm:$0x3]  ;;  %v57_v4 = vlaneseq  ;;  %v42_v6 = vld [vmem:[#allocation5] sm:$0xff] }
  0x1a   :  { %172 = vset.pattern.permute.xlu0 %v241_v0  ;;  %v242_v2 = vmov 1983009808   ;;  %v40_v5 = vld [vmem:[#allocation2] sm:$0xff]  ;;  %v41_v7 = vld [vmem:[#allocation2 + $0x8] sm:$0xff]  ;;  %v43_v8 = vld [vmem:[#allocation5 + $0x8] sm:$0xff]  ;;  %s243_s0 = smov [#allocation7]  }
  0x1b   :  { %48 = vperm.xlu0 %172, %v39_v1   ;;  %v55_v3 = vunpack.c.l.s4 %v242_v2  ;;  %v44_v9 = vsub.f32 %v40_v5, %v42_v6  ;;  %v58_v11 = vshrl.u32 %v57_v4, 7  ;;  %v45_v12 = vsub.f32 %v41_v7, %v43_v8  ;;  %s157_s1 = sshll.u32 %s243_s0, 4  ;;  %s158_s1 = int_to_ptr.vmem [resolvable:$true] %s157_s1 }
  0x1c   :  { %s213_s2 = scalar_lea.vmem %s158_s1, 256  ;;  %p218_p11 = scmp.lt.s32.totalorder %s158_s1, %s158_s1 }
  0x1d   :  { %v56_v10 = vunpack.c.0.s8 %v55_v3  ;;  %v53_v13 = vcombine.high %v44_v9, %v44_v9  ;;  %v70_v15 = vcombine.high %v45_v12, %v45_v12  ;;  %p214_p10 = scmp.ne.s32.totalorder %s158_s1, %s213_s2  ;;  %p219_p12 = scmp.lt.s32.totalorder %s213_s2, %s213_s2 }
  0x1f   :  { %v59_v14 = vsub.s32 %v56_v10, %v58_v11  ;;  %p220_p13 = por %p219_p12, %p218_p11 }
  0x21   :  { %v60_v16 = vrot.slane %v44_v9, %v59_v14  ;;  %v67_v17 = vrot.slane %v53_v13, %v59_v14  ;;  %v77_v18 = vrot.slane %v45_v12, %v59_v14  ;;  %v84_v19 = vrot.slane %v70_v15, %v59_v14  ;;  %p221_p0 = pnand %p220_p13, %p214_p10 }
  0x23   :  { %v68_v20 = vcombine.high %v60_v16, %v60_v16  ;;  %v69_v21 = vcombine.high %v67_v17, %v67_v17  ;;  %v85_v22 = vcombine.high %v77_v18, %v77_v18  ;;  %v86_v23 = vcombine.high %v84_v19, %v84_v19 }
  0x96   :  { %v49_v24 = vpop.permute.xlu0 %48 }
  0x97   :  { %v95_v25 = vmul.f32 %v60_v16, %v49_v24  ;;  %v96_v26 = vmul.f32 %v68_v20, %v49_v24  ;;  %v97_v27 = vmul.f32 %v67_v17, %v49_v24  ;;  %v98_v28 = vmul.f32 %v69_v21, %v49_v24 }
  0x98   :  { %v99_v29 = vmul.f32 %v77_v18, %v49_v24  ;;  %v100_v30 = vmul.f32 %v85_v22, %v49_v24  ;;  %v101_v31 = vmul.f32 %v84_v19, %v49_v24  ;;  %v102_v32 = vmul.f32 %v86_v23, %v49_v24 }
  0x99   :  { %v111_v33 = vcombine.low %v95_v25, %v96_v26  ;;  %v112_v34 = vcombine.low %v97_v27, %v98_v28 }
  0x9a   :  { %v128_v35 = vcombine.low %v99_v29, %v100_v30  ;;  %v129_v36 = vcombine.low %v101_v31, %v102_v32 }
  0x9b   :  { %v119_v37 = vrot.slane %v111_v33, %v59_v14  ;;  %v126_v38 = vrot.slane %v112_v34, %v59_v14 }
  0x9c   :  { %v136_v39 = vrot.slane %v128_v35, %v59_v14  ;;  %v143_v40 = vrot.slane %v129_v36, %v59_v14 }
  0x9d   :  { %v127_v41 = vcombine.low %v119_v37, %v126_v38 }
  0x9e   :  { %v144_v42 = vcombine.low %v136_v39, %v143_v40 }
  0x9f   :  { %v147_v43 = vadd.f32 %v127_v41, %v42_v6 }
  0xa0   :  { %v148_v44 = vadd.f32 %v144_v42, %v43_v8 }
  0xa1   :  { %149 = vst [vmem:[#allocation7] sm:$0xff] %v147_v43 }
  0xa2   :  { %150 = vst [vmem:[#allocation7 + $0x8] sm:$0xff] %v148_v44 }
  0xa3   :  { %224 = shalt.err (!%p221_p0)
}
  0xa4   :  { %160 = dma.vmem_to_hbm [thread:$0]  %s158_s1, 256, %s279_s3, [#allocation4]  }
  0xa5   :  { %237 = dma.done.wait [#allocation4], 256  }
  0xa6   :  { %238 = vsyncadd [#allocation4], 4294967040 }
  0xa7   :  { %164 = vsyncpa [#allocation3], 1 }
  0xa8   :  { %165 = vsyncpa [#allocation6], 1 }
  0xa9   :  { %166 = vsyncpa [#allocation4], 1 }

</bundles_post_ra>
